<compile_context>
chip_gen: v7x
topology: tpu7x:2x2x1
jax: 0.10.0
libtpu: 0.0.40
codegen_flags: <defaults>
</compile_context>

<pallas_src>
import jax
import jax.numpy as jnp
from jax.experimental import pallas as pl
from jax.experimental.pallas import tpu as pltpu


def _dmd_atilde_kernel(x_ref, urt_ref, vr_ref, sinv_ref, o_ref):
    # Views for one grid step (a block of Bb batch elements):
    #   x_ref    : (Bb, n,  m)   full data matrix (NOT pre-sliced to X2)
    #   urt_ref  : (Bb, r,  n)   U_r^T
    #   vr_ref   : (Bb, m1, r)   V_r
    #   sinv_ref : (Bb, 1,  r)   1 / (S_r + 1e-6)
    #   o_ref    : (Bb, r,  r)   A_tilde
    #
    # Big matmul first, with m (dense, lane-friendly) as the output lane dim.
    t_full = jnp.einsum(
        "brn,bnm->brm", urt_ref[...], x_ref[...],
        preferred_element_type=jnp.float32)                  # (Bb, r, m)
    # (U_r^T @ x)[:, :, 1:] == U_r^T @ x[:, :, 1:] == U_r^T @ X2 ; slicing the
    # tiny (r, m) intermediate is a cheap lane op (vs an HBM copy of X2).
    t2 = t_full[:, :, 1:]                                    # (Bb, r, m-1)
    # V_r @ diag(S_inv) == column scaling of V_r.
    vs = (vr_ref[...] * sinv_ref[...]).astype(jnp.float32)   # (Bb, m-1, r)
    a = jnp.einsum(
        "brk,bkq->brq", t2, vs,
        preferred_element_type=jnp.float32)                  # (Bb, r, r)
    o_ref[...] = a.astype(o_ref.dtype)


def _pick_batch_block(bs, target=8):
    """Largest divisor of bs that is <= target (amortizes per-step overhead)."""
    b = min(bs, target)
    while bs % b:
        b -= 1
    return b


def dmd_svd_atilde(x, r, batch_block=None):
    """DMD forward (a_method='svd', a_return='reduced'). x: (bs, n, m)."""
    bs, n, m = x.shape
    m1 = m - 1
    assert r <= min(n, m1), "truncation rank r must be <= min(n, m-1)"

    X1 = x[:, :, :-1]                                        # (bs, n, m1)
    # TODO(synk): SVD has no clean Pallas equivalent; computed with jnp.linalg.svd (XLA).
    U, S, Vh = jnp.linalg.svd(X1, full_matrices=False)       # U:(bs,n,k) S:(bs,k) Vh:(bs,k,m1)
    U_rt = jnp.transpose(U[:, :, :r], (0, 2, 1))             # (bs, r, n)
    V_r = jnp.transpose(Vh[:, :r, :], (0, 2, 1))             # (bs, m1, r)  (torch V convention)
    S_r_inv = (1.0 / (S[:, :r] + 1e-6)).reshape(bs, 1, r)    # (bs, 1, r)

    dt = x.dtype
    itemsize = jnp.dtype(dt).itemsize
    Bb = batch_block if batch_block is not None else _pick_batch_block(bs)
    grid = (bs // Bb,)

    flops = 2 * bs * r * n * m + 2 * bs * r * m1 * r
    bytes_accessed = (x.size + bs * r * n + bs * m1 * r + bs * r
                      + bs * r * r) * itemsize

    A_tilde = pl.pallas_call(
        _dmd_atilde_kernel,
        out_shape=jax.ShapeDtypeStruct((bs, r, r), dt),
        grid_spec=pltpu.PrefetchScalarGridSpec(
            num_scalar_prefetch=0,
            grid=grid,
            in_specs=[
                pl.BlockSpec((Bb, n, m), lambda b: (b, 0, 0)),
                pl.BlockSpec((Bb, r, n), lambda b: (b, 0, 0)),
                pl.BlockSpec((Bb, m1, r), lambda b: (b, 0, 0)),
                pl.BlockSpec((Bb, 1, r), lambda b: (b, 0, 0)),
            ],
            out_specs=pl.BlockSpec((Bb, r, r), lambda b: (b, 0, 0)),
        ),
        compiler_params=pltpu.CompilerParams(
            dimension_semantics=("parallel",)),
        cost_estimate=pl.CostEstimate(
            flops=flops, transcendentals=0, bytes_accessed=bytes_accessed),
    )(x, U_rt.astype(dt), V_r.astype(dt), S_r_inv.astype(dt))
    return A_tilde


def _dmd_svd_atilde_ref(x, r):
    """Pure-JAX reference for correctness checking (same SVD convention)."""
    X1 = x[:, :, :-1]
    X2 = x[:, :, 1:]
    U, S, Vh = jnp.linalg.svd(X1, full_matrices=False)
    U_r = U[:, :, :r]
    S_r_inv = 1.0 / (S[:, :r] + 1e-6)
    V_r = jnp.transpose(Vh[:, :r, :], (0, 2, 1))
    Sinv = jax.vmap(jnp.diag)(S_r_inv)                       # (bs, r, r)
    U_rt = jnp.transpose(U_r, (0, 2, 1))
    return U_rt @ (X2 @ (V_r @ Sinv))


if __name__ == "__main__":
    key = jax.random.PRNGKey(0)
    bs, n, m = 2, 8, 16
    r = 4
    x = jax.random.normal(key, (bs, n, m), dtype=jnp.float32)

    A_tilde = dmd_svd_atilde(x, r)
    A_tilde = jax.block_until_ready(A_tilde)

    A_ref = _dmd_svd_atilde_ref(x, r)
    assert A_tilde.shape == (bs, r, r)
    assert jnp.allclose(A_tilde, A_ref, atol=1e-4, rtol=1e-4), "mismatch vs reference"

    print("KERNEL_OK")
</pallas_src>

<mosaic_0001>
module attributes {stable_mosaic.version = 11 : i64} {
  func.func @_dmd_atilde_kernel(%arg0: i32, %arg1: memref<2x8x16xf32, #tpu.memory_space<vmem>>, %arg2: memref<2x4x8xf32, #tpu.memory_space<vmem>>, %arg3: memref<2x15x4xf32, #tpu.memory_space<vmem>>, %arg4: memref<2x1x4xf32, #tpu.memory_space<vmem>>, %arg5: memref<2x4x4xf32, #tpu.memory_space<vmem>>) attributes {dimension_semantics = [#tpu.dimension_semantics<parallel>], iteration_bounds = array<i64: 1>, scalar_prefetch = 0 : i64, scratch_operands = 0 : i64, tpu.core_type = #tpu.core_type<tc>, window_params = [{transform_indices = @transform_0, window_bounds = array<i64: 2, 8, 16>}, {transform_indices = @transform_1, window_bounds = array<i64: 2, 4, 8>}, {transform_indices = @transform_2, window_bounds = array<i64: 2, 15, 4>}, {transform_indices = @transform_3, window_bounds = array<i64: 2, 1, 4>}, {transform_indices = @transform_4, window_bounds = array<i64: 2, 4, 4>}]} {
    %c0 = arith.constant 0 : index
    %c0_0 = arith.constant 0 : index
    %c0_1 = arith.constant 0 : index
    %0 = vector.load %arg2[%c0, %c0_0, %c0_1] : memref<2x4x8xf32, #tpu.memory_space<vmem>>, vector<2x4x8xf32>
    %c0_2 = arith.constant 0 : index
    %c0_3 = arith.constant 0 : index
    %c0_4 = arith.constant 0 : index
    %1 = vector.load %arg1[%c0_2, %c0_3, %c0_4] : memref<2x8x16xf32, #tpu.memory_space<vmem>>, vector<2x8x16xf32>
    "tpu.trace_start"() <{level = 10 : i32, message = "brn,bnm->brm"}> : () -> ()
    %cst = arith.constant dense<0.000000e+00> : vector<2x4x16xf32>
    %2 = tpu.matmul %0, %1, %cst {dimension_numbers = #tpu.dot_dimension_numbers<[2], [1], [1], [2], [0, 0, 0, 1, 1, 2], [0], [0]>} : vector<2x4x8xf32>, vector<2x8x16xf32>, vector<2x4x16xf32> -> vector<2x4x16xf32>
    "tpu.trace_stop"() : () -> ()
    %3 = vector.extract_strided_slice %2 {offsets = [0, 0, 1], sizes = [2, 4, 15], strides = [1, 1, 1]} : vector<2x4x16xf32> to vector<2x4x15xf32>
    %c0_5 = arith.constant 0 : index
    %c0_6 = arith.constant 0 : index
    %c0_7 = arith.constant 0 : index
    %4 = vector.load %arg3[%c0_5, %c0_6, %c0_7] : memref<2x15x4xf32, #tpu.memory_space<vmem>>, vector<2x15x4xf32>
    %c0_8 = arith.constant 0 : index
    %c0_9 = arith.constant 0 : index
    %c0_10 = arith.constant 0 : index
    %5 = vector.load %arg4[%c0_8, %c0_9, %c0_10] : memref<2x1x4xf32, #tpu.memory_space<vmem>>, vector<2x1x4xf32>
    %6 = vector.broadcast %5 : vector<2x1x4xf32> to vector<2x15x4xf32>
    %7 = arith.mulf %4, %6 : vector<2x15x4xf32>
    "tpu.trace_start"() <{level = 10 : i32, message = "brk,bkq->brq"}> : () -> ()
    %cst_11 = arith.constant dense<0.000000e+00> : vector<2x4x4xf32>
    %8 = tpu.matmul %3, %7, %cst_11 {dimension_numbers = #tpu.dot_dimension_numbers<[2], [1], [1], [2], [0, 0, 0, 1, 1, 2], [0], [0]>} : vector<2x4x15xf32>, vector<2x15x4xf32>, vector<2x4x4xf32> -> vector<2x4x4xf32>
    "tpu.trace_stop"() : () -> ()
    %c0_12 = arith.constant 0 : index
    %c0_13 = arith.constant 0 : index
    %c0_14 = arith.constant 0 : index
    %9 = vector.load %arg5[%c0_12, %c0_13, %c0_14] : memref<2x4x4xf32, #tpu.memory_space<vmem>>, vector<2x4x4xf32>
    tpu.vector_store %arg5[%c0_12, %c0_13, %c0_14], %8 {strides = array<i32>} : memref<2x4x4xf32, #tpu.memory_space<vmem>>, vector<2x4x4xf32>,
    return
  }
  func.func @transform_0(%arg0: i32) -> (i32, i32, i32) {
    %c0_i32 = arith.constant 0 : i32
    %c0_i32_0 = arith.constant 0 : i32
    %c0_i32_1 = arith.constant 0 : i32
    return %arg0, %c0_i32, %c0_i32_0 : i32, i32, i32
  }
  func.func @transform_1(%arg0: i32) -> (i32, i32, i32) {
    %c0_i32 = arith.constant 0 : i32
    %c0_i32_0 = arith.constant 0 : i32
    %c0_i32_1 = arith.constant 0 : i32
    return %arg0, %c0_i32, %c0_i32_0 : i32, i32, i32
  }
  func.func @transform_2(%arg0: i32) -> (i32, i32, i32) {
    %c0_i32 = arith.constant 0 : i32
    %c0_i32_0 = arith.constant 0 : i32
    %c0_i32_1 = arith.constant 0 : i32
    return %arg0, %c0_i32, %c0_i32_0 : i32, i32, i32
  }
  func.func @transform_3(%arg0: i32) -> (i32, i32, i32) {
    %c0_i32 = arith.constant 0 : i32
    %c0_i32_0 = arith.constant 0 : i32
    %c0_i32_1 = arith.constant 0 : i32
    return %arg0, %c0_i32, %c0_i32_0 : i32, i32, i32
  }
  func.func @transform_4(%arg0: i32) -> (i32, i32, i32) {
    %c0_i32 = arith.constant 0 : i32
    %c0_i32_0 = arith.constant 0 : i32
    %c0_i32_1 = arith.constant 0 : i32
    return %arg0, %c0_i32, %c0_i32_0 : i32, i32, i32
  }
}

</mosaic_0001>

<bundles_post_ra>
// kernel: tpu_custom_call.1
= control target key start
LH: loop header
LB: loop body
LE: loop exit
PB: predicated region body
PF: predicated region fallthrough
CT: control target
= control target key end

     0   :  { %vm22_vm0 = vcmask 64512   ;;  %v450_v2 = vmov 0.0   ;;  %vm451_vm1 = vmmov 0   ;;  %s525_s0 = inlined_call_operand.vmem [shape: f32[2,8,16], index: 0, kind: input, shape index: {}]   ;;  %s526_s1 = inlined_call_operand.vmem [shape: f32[2,4,8], index: 1, kind: input, shape index: {}]   ;;  %s527_s2 = inlined_call_operand.vmem [shape: f32[2,15,4], index: 2, kind: input, shape index: {}]   ;;  %s528_s3 = inlined_call_operand.vmem [shape: f32[2,1,4], index: 3, kind: input, shape index: {}]   ;;  %s529_s4 = inlined_call_operand.hbm [shape: f32[2,4,4], index: 4, kind: output, shape index: {}]  }
   0x1   :  { %v20_v0 = vld [vmem:[%s525_s0] sm:$0xff]  ;;  %386 = vmatprep.subr.mxu0 %v450_v2  ;;  %388 = vmatprep.mubr.msk.f32.mxu0 %vm451_vm1, %v450_v2  ;;  %v21_v3 = vld [vmem:[%s525_s0 + $0x8] sm:$0xff] }
   0x2   :  { %v18_v1 = vld [vmem:[%s526_s1] sm:$0xf] }
   0x3   :  { %9 = vsyncpa [#allocation3], 0  ;;  %387 = vmatpush3.msra.mxu0 %v20_v0  ;;  %391 = vmatprep.subr.mxu1 %v450_v2  ;;  %v19_v4 = vld [vmem:[%s526_s1 + $0x4] sm:$0xf]  ;;  %v170_v6 = vld [vmem:[%s527_s2 + $0x8] sm:$0x7f] }
   0x4   :  { %389 = vmatmul.mubr.msk.f32.vlgmr.msra.gmra.mrb[0].mxu0 %vm22_vm0, %v18_v1  ;;  %392 = vmatpush3.msra.mxu1 %v21_v3  ;;  %v169_v5 = vld [vmem:[%s527_s2] sm:$0xff]  ;;  %v452_v8 = vmov 0.0|0.0   ;;  %vm197_vm2 = vcmask 1046528   ;;  %vm453_vm3 = vmmov 1   ;;  %v171_v12 = vld [vmem:[%s527_s2 + $0x10] sm:$0xff]  ;;  %s454_s7 = smov 127  }
   0x5   :  { %393 = vmatprep.mubr.msk.f32.mxu1 %vm451_vm1, %v450_v2  ;;  %400 = vmatprep.mubr.msk.f32.mxu0 %vm451_vm1, %v450_v2  ;;  %v370_v7 = vld [vmem:[%s528_s3] ss:$0 sm:$0xff]  ;;  %vm412_vm4 = vmpackc.low %vm197_vm2, %vm453_vm3  ;;  %v172_v13 = vld [vmem:[%s527_s2 + $0x18] sm:$0x7f]  ;;  %vm194_vm5 = vcmask 121856   ;;  %vm349_vm6 = vcmask 27648  }
   0x6   :  { %394 = vmatmul.mubr.msk.f32.vlgmr.msra.gmra.mrb[0].mxu1 %vm22_vm0, %v19_v4  ;;  %410 = vmatprep.subr.bf16.mxu0 %v452_v8  ;;  %v187_v9 = vmul.f32 %v370_v7, %v169_v5  ;;  %v188_v10 = vmul.f32 %v370_v7, %v170_v6  ;;  %v371_v14 = vld [vmem:[%s528_s3 + $0x1] ss:$0 sm:$0xff]  ;;  %s455_s2 = smov [#allocation2]  }
   0x7   :  { %407 = vmatprep.mubr.msk.f32.mxu1 %vm451_vm1, %v450_v2  ;;  %414 = vmatprep.subr.bf16.mxu1 %v452_v8  ;;  %v189_v15 = vmul.f32 %v371_v14, %v171_v12  ;;  %v190_v16 = vmul.f32 %v371_v14, %v172_v13  ;;  %s357_s8 = sshll.u32 %s455_s2, 4  ;;  %s358_s8 = int_to_ptr.vmem [resolvable:$true] %s357_s8 }
   0x8   :  { %v411_v11 = vpack.c.bf16 %v188_v10, %v187_v9  ;;  %s426_s3 = scalar_lea.vmem %s358_s8, 128  ;;  %p431_p1 = scmp.lt.s32.totalorder %s358_s8, %s358_s8 }
   0x9   :  { %v415_v17 = vpack.c.bf16 %v190_v16, %v189_v15  ;;  %p427_p0 = scmp.ne.s32.totalorder %s358_s8, %s426_s3  ;;  %p432_p2 = scmp.lt.s32.totalorder %s426_s3, %s426_s3 }
   0xa   :  { %413 = vmatpush3.bf16.msk.msra.mxu0 %vm412_vm4, %v411_v11 }
   0xb   :  { %417 = vmatpush3.bf16.msk.msra.mxu1 %vm412_vm4, %v415_v17  ;;  %p433_p3 = por %p432_p2, %p431_p1 }
   0xd   :  { %p434_p4 = pnand %p433_p3, %p427_p0 }
  0xd7   :  { %v92_v18 = vpop.f32.mrb[0].mxu0 }
  0xd8   :  { %192 = vrot.lane.b32.xlu0 %v92_v18, %s454_s7  ;;  %v390_v19 = vpop.f32.mrb[1].mxu0 }
  0xd9   :  { %v165_v20 = vpop.f32.mrb[0].mxu1 }
  0xda   :  { %v395_v21 = vpop.f32.mrb[1].mxu1 }
  0xdc   :  { %272 = vrot.lane.b32.xlu0 %v165_v20, %s454_s7 }
 0x14a   :  { %v193_v22 = vpop.permute.xlu0 %192 }
 0x14b   :  { %401 = vmatmul.mubr.msk.f32.vlgmr.msra.gmra.mrb[2].mxu0 %vm194_vm5, %v193_v22 }
 0x14e   :  { %v273_v23 = vpop.permute.xlu0 %272 }
 0x14f   :  { %408 = vmatmul.mubr.msk.f32.vlgmr.msra.gmra.mrb[2].mxu1 %vm194_vm5, %v273_v23 }
 0x21e   :  { %v267_v24 = vpop.f32.mrb[2].mxu0 }
 0x21f   :  { %350 = vst.msk [vmem:[#allocation2] sm:$0xf] %vm349_vm6, %v267_v24  ;;  %v402_v25 = vpop.f32.mrb[3].mxu0 }
 0x222   :  { %v345_v26 = vpop.f32.mrb[2].mxu1 }
 0x223   :  { %351 = vst.msk [vmem:[#allocation2 + $0x4] sm:$0xf] %vm349_vm6, %v345_v26  ;;  %v409_v27 = vpop.f32.mrb[3].mxu1 }
 0x224   :  { %437 = shalt.err (!%p434_p4)
}
 0x225   :  { %s438_s11 = scalar_lea.hbm %s529_s4, 128 }
 0x226   :  { %p439_p5 = scmp.ne.s32.totalorder %s529_s4, %s438_s11  ;;  %p442_p6 = scmp.lt.u32.totalorder %s438_s11, %s529_s4 }
 0x228   :  { %p444_p7 = pnand %p442_p6, %p439_p5 }
 0x22a   :  { %447 = shalt.err (!%p444_p7)
}
 0x22b   :  { %s456_s16 = smov 64   ;;  %s457_s17 = smov 4  }
 0x22c   :  { %363 = dma.vmem_to_hbm [thread:$0]  %s358_s8, 128, %s529_s4, [#allocation3], %s456_s16, %s456_s16, %s457_s17  }
 0x22d   :  { %448 = dma.done.wait [#allocation3], 128  }
 0x22e   :  { %449 = vsyncadd [#allocation3], 4294967168 }
 0x22f   :  { %367 = vsyncpa [#allocation3], 1 }

</bundles_post_ra>
